<compile_context>
chip_gen: v6e
topology: v6e:2x2x1
jax: 0.10.0
libtpu: 0.0.40
codegen_flags: <defaults>
</compile_context>

<pallas_src>
import numpy as np
import jax
import jax.numpy as jnp
from jax.experimental import pallas as pl
from jax.experimental.pallas import tpu as pltpu


# ----------------------------------------------------------------------------
# Config (mirrors the fields of `configs` used by the torch module)
# ----------------------------------------------------------------------------
MOMENTUM_PARAMS = (0.9, 0.8, 0.7)   # configs.momentum_params
BATCH_SIZE = 8                      # configs.batch_size
DROPOUT = 0.1                       # configs.dropout (defined, unused in fwd)
BPTT = False                        # configs.bptt (autodiff-only flag)

CHANNELS = 4                        # channels
VECTOR_LEN = 32                     # vector_len
N_MOM = len(MOMENTUM_PARAMS)


# ----------------------------------------------------------------------------
# Deterministic parameter construction (same formulas as torch __init__)
# ----------------------------------------------------------------------------
def build_mul_tensor(channels, momentum_params, batch):
    """Per-channel (identical) multiplier, shape (C, N, B+1, B) — reference only."""
    mt = np.zeros((channels, len(momentum_params), batch + 1, batch), dtype=np.float32)
    for idx, coeff in enumerate(momentum_params):
        for i1 in range(batch + 1):
            for i2 in range(batch):
                if i2 + 1 >= i1:
                    p = i2 + 1 - i1
                    mt[:, idx, i1, i2] = ((1.0 - coeff) ** (1 if i1 > 0 else 0)) * (coeff ** p)
    return jnp.asarray(mt)


def build_learnable_matrix(channels, n_mom, vector_len):
    temp = np.zeros((channels, 2 * n_mom + 1, vector_len), dtype=np.float32)
    for idx in range(2 * n_mom + 1):
        temp[:, idx, :] = -((n_mom - idx) ** 2 / 4.0)
    return jnp.asarray(temp)


def build_kernel_multipliers(momentum_params, batch):
    """Channel-invariant multipliers in the split, concat-free form.

    fm_vec   : (N*B + N, B)  — vector-contribution rows (MXU operand)
    mom_coeff: (N*B + N, 1)  — per-row momentum coefficient (rank-1 VPU FMA)

    With vec rows b=0..B-1 and momentum rows mom_n:
      row n*B + b : out_n[b] = mom_coeff[n*B+b] * mom_n + fm_vec[n*B+b, :] @ vec
      row N*B + n : new momentum state for branch n
    which reproduces torch's cat([mom, lhs @ mul]) / split exactly.
    """
    N = len(momentum_params)
    B = batch
    mul = np.zeros((N, B + 1, B), dtype=np.float32)
    for n, coeff in enumerate(momentum_params):
        for k in range(B + 1):
            for b in range(B):
                if b + 1 >= k:
                    p = b + 1 - k
                    mul[n, k, b] = ((1.0 - coeff) ** (1 if k > 0 else 0)) * (coeff ** p)

    fm_vec = np.zeros((N * B + N, B), dtype=np.float32)
    mom_coeff = np.zeros((N * B + N, 1), dtype=np.float32)
    for n in range(N):
        mom_coeff[n * B + 0, 0] = 1.0                 # out row 0 copies the momentum
        for b in range(1, B):
            mom_coeff[n * B + b, 0] = mul[n, 0, b - 1]
            fm_vec[n * B + b, :] = mul[n, 1:, b - 1]
        mom_coeff[N * B + n, 0] = mul[n, 0, B - 1]    # new-momentum row
        fm_vec[N * B + n, :] = mul[n, 1:, B - 1]
    return jnp.asarray(fm_vec), jnp.asarray(mom_coeff)


# ----------------------------------------------------------------------------
# Kernel-native layout helpers (called ONCE at init / state conversion)
# ----------------------------------------------------------------------------
def lm_to_kernel_layout(learnable_matrix):
    """(C, 2N+1, V) -> (2N+1, C*V) lane-dense layout (hoisted to init time)."""
    C, S, V = learnable_matrix.shape
    return jnp.transpose(learnable_matrix, (1, 0, 2)).reshape(S, C * V).astype(jnp.float32)


def mom_to_kernel_layout(momentum_matrix):
    """torch layout (C, N, V, 1) -> kernel layout (N, C*V)."""
    C, N, V, _ = momentum_matrix.shape
    return jnp.transpose(momentum_matrix[..., 0], (1, 0, 2)).reshape(N, C * V).astype(jnp.float32)


def mom_from_kernel_layout(mom_state, channels, vector_len):
    """kernel layout (N, C*V) -> torch layout (C, N, V, 1)."""
    N = mom_state.shape[0]
    return jnp.transpose(mom_state.reshape(N, channels, vector_len), (1, 0, 2))[..., None]


def reset_momentum(channels, vector_len, n_mom=N_MOM):
    return jnp.zeros((n_mom, channels * vector_len), jnp.float32)


# ----------------------------------------------------------------------------
# Pallas kernel — grid=(T,), momentum state carried in the resident output
# block, loop-invariant softmax hoisted to t == 0.
#   mom_init_ref : (N, L)        initial state (read once, aliased with output)
#   lm_ref       : (2N+1, L)     learnable matrix (kernel layout)
#   fmv_ref      : (N*B+N, B)    fused multiplier, vector part
#   mcoef_ref    : (N*B+N, 1)    per-row momentum coefficient
#   vec_ref      : (B, L)        vector[t] (lane-dense, streamed by BlockSpec)
# outputs:
#   out_ref      : (B, L)        out[t]
#   mom_ref      : (N, L)        carried / final momentum state
# scratch:
#   m1_ref (N, L), m2_ref (1, L) : softmax-derived combine weights
# ----------------------------------------------------------------------------
def _momentum_kernel(mom_init_ref, lm_ref, fmv_ref, mcoef_ref, vec_ref,
                     out_ref, mom_ref, m1_ref, m2_ref):
    t = pl.program_id(0)
    N = mom_ref.shape[0]
    B = vec_ref.shape[0]

    @pl.when(t == 0)
    def _():
        # carry init + loop-invariant softmax, computed once for all T steps
        mom_ref[...] = mom_init_ref[...]
        lm = lm_ref[...]                                        # (2N+1, L)
        m = jnp.max(lm, axis=0, keepdims=True)
        e = jnp.exp(lm - m)
        # exact reciprocal: approx=True (~2^-12 rel err) would strain 1e-5 tol
        inv = pl.reciprocal(jnp.sum(e, axis=0, keepdims=True), approx=False)
        mat = e * inv                                           # softmax over sublanes
        m2_ref[...] = 2.0 * jnp.sum(mat[:N, :], axis=0, keepdims=True) + mat[N:N + 1, :]
        for n in range(N):   # N is small & static -> unrolled at trace time
            # matrix_1[n] = 2*(mat[N+1+n] - mat[N-1-n])  (flip of mat[:N])
            m1_ref[n:n + 1, :] = 2.0 * (mat[N + 1 + n:N + 2 + n, :] - mat[N - 1 - n:N - n, :])

    vec = vec_ref[...]            # (B, L)  — one contiguous lane-dense block
    mom_in = mom_ref[...]         # (N, L)  — carried state

    # torch: if all(momentum_matrix == 0): momentum = broadcast of vector[:, 0]
    # (max|.| == 0 agrees with all(== 0) for all finite values, incl. -0.0)
    is_zero = (jnp.max(jnp.abs(mom_in)) == 0.0).astype(jnp.float32)
    init = jnp.broadcast_to(vec[0:1, :], mom_in.shape)
    mom = mom_in + is_zero * (init - mom_in)

    # single MXU matmul for the vector contribution of all momentum branches;
    # momentum contribution folded in as rank-1 broadcast FMAs (no concat).
    vecpart = jnp.dot(fmv_ref[...], vec, preferred_element_type=jnp.float32)  # (N*B+N, L)
    mcoef = mcoef_ref[...]                                                    # (N*B+N, 1)

    # out[b] = matrix_2 * vec[b] + sum_n matrix_1[n] * out_n[b]
    acc = m2_ref[...] * vec                                                   # (B, L)
    for n in range(N):
        branch = (vecpart[n * B:(n + 1) * B, :]
                  + mcoef[n * B:(n + 1) * B, :] * mom[n:n + 1, :])            # (B, L)
        acc = acc + m1_ref[n:n + 1, :] * branch
    out_ref[...] = acc

    # new momentum state -> carried in the resident output block
    mom_ref[...] = vecpart[N * B:N * B + N, :] + mcoef[N * B:N * B + N, :] * mom


# ----------------------------------------------------------------------------
# Wrapper: T fused forward steps in a single pallas_call
# ----------------------------------------------------------------------------
def momentum_batch_forward_seq(vectors, mom_state, lm_kernel, fm_vec, mom_coeff):
    """vectors: (T, B, C, V) f32; mom_state: (N, C*V) f32 (kernel-native);
    lm_kernel: (2N+1, C*V) f32 (kernel-native, built once at init);
    fm_vec: (N*B+N, B); mom_coeff: (N*B+N, 1).
    Returns (out (T, B, C, V), new mom_state (N, C*V))."""
    T, B, C, V = vectors.shape
    N = mom_state.shape[0]
    L = C * V
    if L % 128 != 0:
        # TODO(synk): pad the lane axis to a multiple of 128 for odd configs
        # (full-array blocks stay legal but stores become lane-masked).
        raise NotImplementedError("lane-dense kernel assumes channels*vector_len % 128 == 0")

    # (T, B, C, V) -> (T, B, C*V) is a free contiguous reshape (no transpose).
    vec_tbl = vectors.reshape(T, B, L).astype(jnp.float32)
    NBN = N * B + N

    cost = pl.CostEstimate(
        flops=T * (2 * NBN * B * L + 12 * B * L),
        transcendentals=(2 * N + 1) * L,
        bytes_accessed=4 * (2 * T * B * L + 2 * N * L + (2 * N + 1) * L + NBN * (B + 1)),
    )

    out_tbl, new_mom = pl.pallas_call(
        _momentum_kernel,
        out_shape=(
            jax.ShapeDtypeStruct((T, B, L), jnp.float32),
            jax.ShapeDtypeStruct((N, L), jnp.float32),
        ),
        grid=(T,),
        in_specs=[
            pl.BlockSpec((N, L), lambda t: (0, 0)),              # momentum state (fetched once)
            pl.BlockSpec((2 * N + 1, L), lambda t: (0, 0)),      # learnable matrix
            pl.BlockSpec((NBN, B), lambda t: (0, 0)),            # fused multiplier, vec part
            pl.BlockSpec((NBN, 1), lambda t: (0, 0)),            # momentum coefficients
            pl.BlockSpec((None, B, L), lambda t: (t, 0, 0)),     # vector[t]
        ],
        out_specs=(
            pl.BlockSpec((None, B, L), lambda t: (t, 0, 0)),     # out[t]
            pl.BlockSpec((N, L), lambda t: (0, 0)),              # carried / final momentum
        ),
        scratch_shapes=[
            pltpu.VMEM((N, L), jnp.float32),                     # matrix_1
            pltpu.VMEM((1, L), jnp.float32),                     # matrix_2
        ],
        input_output_aliases={0: 1},                             # state updates in place
        compiler_params=pltpu.CompilerParams(
            dimension_semantics=("arbitrary",)),                 # sequential carry axis
        cost_estimate=cost,
    )(mom_state, lm_kernel, fm_vec, mom_coeff, vec_tbl)

    return out_tbl.reshape(T, B, C, V), new_mom


def momentum_batch_forward(vector, momentum_matrix, learnable_matrix, fm_vec, mom_coeff):
    """Single-step, torch-layout interface (vector (B,C,V), momentum (C,N,V,1)).
    Prefer momentum_batch_forward_seq with kernel-native state for repeated use."""
    C = momentum_matrix.shape[0]
    V = momentum_matrix.shape[2]
    out, mom_state = momentum_batch_forward_seq(
        vector[None], mom_to_kernel_layout(momentum_matrix),
        lm_to_kernel_layout(learnable_matrix), fm_vec, mom_coeff)
    return out[0], mom_from_kernel_layout(mom_state, C, V)
    # TODO(synk): nn.Dropout is instantiated in __init__ but never applied in
    # forward, and bptt/detach only affect autodiff -> no forward-value effect.


# ----------------------------------------------------------------------------
# Pure-JAX reference (mirrors the torch forward exactly) for verification
# ----------------------------------------------------------------------------
def reference_forward(vector, momentum_matrix, mul_tensor, learnable_matrix):
    B, C, V = vector.shape
    N = momentum_matrix.shape[1]
    v = jnp.transpose(vector, (1, 0, 2))                             # (C, B, V)
    mom = momentum_matrix
    mom = jnp.where(jnp.all(mom == 0),
                    jnp.broadcast_to(v[:, 0:1, :, None], (C, N, V, 1)), mom)
    lhs = jnp.concatenate(
        [mom, jnp.broadcast_to(jnp.transpose(v, (0, 2, 1))[:, None], (C, N, V, B))],
        axis=3)                                                      # (C, N, V, B+1)
    out = jnp.einsum('cnvk,cnkb->cnvb', lhs, mul_tensor[:, :, :B + 1, :B])
    out = jnp.concatenate([mom, out], axis=3)                        # (C, N, V, B+1)
    new_mom = out[..., -1:]
    out = out[..., :-1]
    mat = jax.nn.softmax(learnable_matrix, axis=1)
    m1 = 2.0 * (mat[:, N + 1:, :] - jnp.flip(mat[:, :N, :], axis=1))  # (C, N, V)
    m2 = 2.0 * jnp.sum(mat[:, :N, :], axis=1, keepdims=True) + mat[:, N:N + 1, :]
    res = jnp.transpose((m1[..., None] * out).sum(axis=1), (0, 2, 1)) + m2 * v
    return jnp.transpose(res, (1, 0, 2)), new_mom


def reference_forward_seq(vectors, momentum_matrix, mul_tensor, learnable_matrix):
    outs = []
    mom = momentum_matrix
    for t in range(vectors.shape[0]):
        o, mom = reference_forward(vectors[t], mom, mul_tensor, learnable_matrix)
        outs.append(o)
    return jnp.stack(outs), mom


if __name__ == "__main__":
    B, C, V, N = BATCH_SIZE, CHANNELS, VECTOR_LEN, N_MOM
    T1, T2 = 4, 2
    key = jax.random.PRNGKey(0)
    k1, k2 = jax.random.split(key)

    vectors1 = jax.random.normal(k1, (T1, B, C, V), dtype=jnp.float32)
    vectors2 = jax.random.normal(k2, (T2, B, C, V), dtype=jnp.float32)

    learnable_matrix = build_learnable_matrix(C, N, V)          # torch-layout parameter
    lm_kernel = lm_to_kernel_layout(learnable_matrix)           # hoisted to init time
    fm_vec, mom_coeff = build_kernel_multipliers(MOMENTUM_PARAMS, B)
    mul_tensor = build_mul_tensor(C, MOMENTUM_PARAMS, B)        # reference-only param

    mom_state = reset_momentum(C, V)                            # zero state -> init branch

    fwd = jax.jit(momentum_batch_forward_seq)

    # call 1: T1 fused steps starting from the zero state
    out1, mom_state1 = fwd(vectors1, mom_state, lm_kernel, fm_vec, mom_coeff)
    out1, mom_state1 = jax.block_until_ready((out1, mom_state1))

    # call 2: T2 more fused steps with the carried non-zero state
    out2, mom_state2 = fwd(vectors2, mom_state1, lm_kernel, fm_vec, mom_coeff)
    out2, mom_state2 = jax.block_until_ready((out2, mom_state2))

    # pure-JAX reference: loop the torch forward step by step (torch layouts)
    ref_mom = jnp.zeros((C, N, V, 1), jnp.float32)
    ref_out1, ref_mom = reference_forward_seq(vectors1, ref_mom, mul_tensor, learnable_matrix)
    ref_out2, ref_mom = reference_forward_seq(vectors2, ref_mom, mul_tensor, learnable_matrix)

    np.testing.assert_allclose(np.asarray(out1), np.asarray(ref_out1), rtol=1e-5, atol=1e-5)
    np.testing.assert_allclose(np.asarray(out2), np.asarray(ref_out2), rtol=1e-5, atol=1e-5)
    np.testing.assert_allclose(np.asarray(mom_from_kernel_layout(mom_state2, C, V)),
                               np.asarray(ref_mom), rtol=1e-5, atol=1e-5)

    print("KERNEL_OK")
</pallas_src>

<mosaic_0001>
module attributes {stable_mosaic.version = 11 : i64} {
  func.func @_momentum_kernel(%arg0: i32, %arg1: memref<3x128xf32, #tpu.memory_space<vmem>>, %arg2: memref<7x128xf32, #tpu.memory_space<vmem>>, %arg3: memref<27x8xf32, #tpu.memory_space<vmem>>, %arg4: memref<27x1xf32, #tpu.memory_space<vmem>>, %arg5: memref<1x8x128xf32, #tpu.memory_space<vmem>>, %arg6: memref<1x8x128xf32, #tpu.memory_space<vmem>>, %arg7: memref<3x128xf32, #tpu.memory_space<vmem>>, %arg8: memref<3x128xf32, #tpu.memory_space<vmem>>, %arg9: memref<1x128xf32, #tpu.memory_space<vmem>>) attributes {dimension_semantics = [#tpu.dimension_semantics<arbitrary>], iteration_bounds = array<i64: 4>, scalar_prefetch = 0 : i64, scratch_operands = 2 : i64, tpu.core_type = #tpu.core_type<tc>, window_params = [{pipeline_mode = #tpu.pipeline_mode<synchronous>, transform_indices = @transform_0, window_bounds = array<i64: 3, 128>}, {pipeline_mode = #tpu.pipeline_mode<synchronous>, transform_indices = @transform_1, window_bounds = array<i64: 7, 128>}, {pipeline_mode = #tpu.pipeline_mode<synchronous>, transform_indices = @transform_2, window_bounds = array<i64: 27, 8>}, {pipeline_mode = #tpu.pipeline_mode<synchronous>, transform_indices = @transform_3, window_bounds = array<i64: 27, 1>}, {transform_indices = @transform_4, window_bounds = array<i64: 1, 8, 128>}, {transform_indices = @transform_5, window_bounds = array<i64: 1, 8, 128>}, {pipeline_mode = #tpu.pipeline_mode<synchronous>, transform_indices = @transform_6, window_bounds = array<i64: 3, 128>}]} {
    %c0_i32 = arith.constant 0 : i32
    %0 = arith.cmpi eq, %arg0, %c0_i32 : i32
    %1 = arith.extui %0 : i1 to i32
    %c0_i32_0 = arith.constant 0 : i32
    %2 = arith.cmpi ne, %1, %c0_i32_0 : i32
    scf.if %2 {
      %c0_22 = arith.constant 0 : index
      %c0_23 = arith.constant 0 : index
      %69 = vector.load %arg1[%c0_22, %c0_23] : memref<3x128xf32, #tpu.memory_space<vmem>>, vector<3x128xf32>
      %c0_24 = arith.constant 0 : index
      %c0_25 = arith.constant 0 : index
      %70 = vector.load %arg7[%c0_24, %c0_25] : memref<3x128xf32, #tpu.memory_space<vmem>>, vector<3x128xf32>
      tpu.vector_store %arg7[%c0_24, %c0_25], %69 {strides = array<i32>} : memref<3x128xf32, #tpu.memory_space<vmem>>, vector<3x128xf32>,
      %c0_26 = arith.constant 0 : index
      %c0_27 = arith.constant 0 : index
      %71 = vector.load %arg2[%c0_26, %c0_27] : memref<7x128xf32, #tpu.memory_space<vmem>>, vector<7x128xf32>
      %cst_28 = arith.constant dense<0xFF800000> : vector<128xf32>
      %72 = vector.multi_reduction <maximumf>, %71, %cst_28 [0] : vector<7x128xf32> to vector<128xf32>
      %73 = vector.shape_cast %72 : vector<128xf32> to vector<1x128xf32>
      %74 = vector.broadcast %73 : vector<1x128xf32> to vector<7x128xf32>
      %75 = arith.subf %71, %74 : vector<7x128xf32>
      %76 = math.exp %75 : vector<7x128xf32>
      %cst_29 = arith.constant dense<0.000000e+00> : vector<128xf32>
      %77 = vector.multi_reduction <add>, %76, %cst_29 [0] : vector<7x128xf32> to vector<128xf32>
      %78 = vector.shape_cast %77 : vector<128xf32> to vector<1x128xf32>
      %79 = tpu.reciprocal %78 : vector<1x128xf32> -> vector<1x128xf32>
      %80 = vector.broadcast %79 : vector<1x128xf32> to vector<7x128xf32>
      %81 = arith.mulf %76, %80 : vector<7x128xf32>
      %82 = vector.extract_strided_slice %81 {offsets = [0, 0], sizes = [3, 128], strides = [1, 1]} : vector<7x128xf32> to vector<3x128xf32>
      %cst_30 = arith.constant dense<0.000000e+00> : vector<128xf32>
      %83 = vector.multi_reduction <add>, %82, %cst_30 [0] : vector<3x128xf32> to vector<128xf32>
      %84 = vector.shape_cast %83 : vector<128xf32> to vector<1x128xf32>
      %cst_31 = arith.constant 2.000000e+00 : f32
      %85 = vector.broadcast %cst_31 : f32 to vector<1x128xf32>
      %86 = arith.mulf %85, %84 : vector<1x128xf32>
      %87 = vector.extract_strided_slice %81 {offsets = [3, 0], sizes = [1, 128], strides = [1, 1]} : vector<7x128xf32> to vector<1x128xf32>
      %88 = arith.addf %86, %87 : vector<1x128xf32>
      %c0_32 = arith.constant 0 : index
      %c0_33 = arith.constant 0 : index
      %89 = vector.load %arg9[%c0_32, %c0_33] : memref<1x128xf32, #tpu.memory_space<vmem>>, vector<1x128xf32>
      tpu.vector_store %arg9[%c0_32, %c0_33], %88 {strides = array<i32>} : memref<1x128xf32, #tpu.memory_space<vmem>>, vector<1x128xf32>,
      %90 = vector.extract_strided_slice %81 {offsets = [4, 0], sizes = [1, 128], strides = [1, 1]} : vector<7x128xf32> to vector<1x128xf32>
      %91 = vector.extract_strided_slice %81 {offsets = [2, 0], sizes = [1, 128], strides = [1, 1]} : vector<7x128xf32> to vector<1x128xf32>
      %92 = arith.subf %90, %91 : vector<1x128xf32>
      %cst_34 = arith.constant 2.000000e+00 : f32
      %93 = vector.broadcast %cst_34 : f32 to vector<1x128xf32>
      %94 = arith.mulf %93, %92 : vector<1x128xf32>
      %c0_35 = arith.constant 0 : index
      %c0_36 = arith.constant 0 : index
      %95 = vector.load %arg8[%c0_35, %c0_36] : memref<3x128xf32, #tpu.memory_space<vmem>>, vector<1x128xf32>
      tpu.vector_store %arg8[%c0_35, %c0_36], %94 {strides = array<i32>} : memref<3x128xf32, #tpu.memory_space<vmem>>, vector<1x128xf32>,
      %96 = vector.extract_strided_slice %81 {offsets = [5, 0], sizes = [1, 128], strides = [1, 1]} : vector<7x128xf32> to vector<1x128xf32>
      %97 = vector.extract_strided_slice %81 {offsets = [1, 0], sizes = [1, 128], strides = [1, 1]} : vector<7x128xf32> to vector<1x128xf32>
      %98 = arith.subf %96, %97 : vector<1x128xf32>
      %cst_37 = arith.constant 2.000000e+00 : f32
      %99 = vector.broadcast %cst_37 : f32 to vector<1x128xf32>
      %100 = arith.mulf %99, %98 : vector<1x128xf32>
      %c1_38 = arith.constant 1 : index
      %c0_39 = arith.constant 0 : index
      %101 = vector.load %arg8[%c1_38, %c0_39] : memref<3x128xf32, #tpu.memory_space<vmem>>, vector<1x128xf32>
      tpu.vector_store %arg8[%c1_38, %c0_39], %100 {strides = array<i32>} : memref<3x128xf32, #tpu.memory_space<vmem>>, vector<1x128xf32>,
      %102 = vector.extract_strided_slice %81 {offsets = [6, 0], sizes = [1, 128], strides = [1, 1]} : vector<7x128xf32> to vector<1x128xf32>
      %103 = vector.extract_strided_slice %81 {offsets = [0, 0], sizes = [1, 128], strides = [1, 1]} : vector<7x128xf32> to vector<1x128xf32>
      %104 = arith.subf %102, %103 : vector<1x128xf32>
      %cst_40 = arith.constant 2.000000e+00 : f32
      %105 = vector.broadcast %cst_40 : f32 to vector<1x128xf32>
      %106 = arith.mulf %105, %104 : vector<1x128xf32>
      %c2_41 = arith.constant 2 : index
      %c0_42 = arith.constant 0 : index
      %107 = vector.load %arg8[%c2_41, %c0_42] : memref<3x128xf32, #tpu.memory_space<vmem>>, vector<1x128xf32>
      tpu.vector_store %arg8[%c2_41, %c0_42], %106 {strides = array<i32>} : memref<3x128xf32, #tpu.memory_space<vmem>>, vector<1x128xf32>,
    } else {
    }
    %c0 = arith.constant 0 : index
    %c0_1 = arith.constant 0 : index
    %c0_2 = arith.constant 0 : index
    %3 = vector.load %arg5[%c0, %c0_1, %c0_2] : memref<1x8x128xf32, #tpu.memory_space<vmem>>, vector<1x8x128xf32>
    %4 = vector.shape_cast %3 : vector<1x8x128xf32> to vector<8x128xf32>
    %c0_3 = arith.constant 0 : index
    %c0_4 = arith.constant 0 : index
    %5 = vector.load %arg7[%c0_3, %c0_4] : memref<3x128xf32, #tpu.memory_space<vmem>>, vector<3x128xf32>
    %6 = math.absf %5 : vector<3x128xf32>
    %7 = vector.shape_cast %6 : vector<3x128xf32> to vector<1x3x128xf32>
    %cst = arith.constant dense<0xFF800000> : vector<1xf32>
    %8 = vector.multi_reduction <maximumf>, %7, %cst [1, 2] : vector<1x3x128xf32> to vector<1xf32>
    %9 = vector.shape_cast %8 : vector<1xf32> to vector<1x1x1xf32>
    %10 = vector.extract %9[0, 0, 0] : f32 from vector<1x1x1xf32>
    %cst_5 = arith.constant 0.000000e+00 : f32
    %11 = arith.cmpf oeq, %10, %cst_5 : f32
    %12 = arith.extui %11 : i1 to i32
    %13 = arith.sitofp %12 : i32 to f32
    %14 = vector.extract_strided_slice %4 {offsets = [0, 0], sizes = [1, 128], strides = [1, 1]} : vector<8x128xf32> to vector<1x128xf32>
    %15 = vector.shape_cast %14 : vector<1x128xf32> to vector<1x128xf32>
    %16 = vector.broadcast %15 : vector<1x128xf32> to vector<3x128xf32>
    %17 = arith.subf %16, %5 : vector<3x128xf32>
    %18 = vector.broadcast %13 : f32 to vector<3x128xf32>
    %19 = arith.mulf %18, %17 : vector<3x128xf32>
    %20 = arith.addf %5, %19 : vector<3x128xf32>
    %c0_6 = arith.constant 0 : index
    %c0_7 = arith.constant 0 : index
    %21 = vector.load %arg3[%c0_6, %c0_7] : memref<27x8xf32, #tpu.memory_space<vmem>>, vector<27x8xf32>
    %cst_8 = arith.constant dense<0.000000e+00> : vector<27x128xf32>
    %22 = tpu.matmul %21, %4, %cst_8 {dimension_numbers = #tpu.dot_dimension_numbers<[1], [0], [0], [1], [0, 0, 1, 1], [], []>} : vector<27x8xf32>, vector<8x128xf32>, vector<27x128xf32> -> vector<27x128xf32>
    %c0_9 = arith.constant 0 : index
    %c0_10 = arith.constant 0 : index
    %23 = vector.load %arg4[%c0_9, %c0_10] : memref<27x1xf32, #tpu.memory_space<vmem>>, vector<27x1xf32>
    %c0_11 = arith.constant 0 : index
    %c0_12 = arith.constant 0 : index
    %24 = vector.load %arg9[%c0_11, %c0_12] : memref<1x128xf32, #tpu.memory_space<vmem>>, vector<1x128xf32>
    %25 = vector.broadcast %24 : vector<1x128xf32> to vector<8x128xf32>
    %26 = arith.mulf %25, %4 : vector<8x128xf32>
    %27 = vector.extract_strided_slice %22 {offsets = [0, 0], sizes = [8, 128], strides = [1, 1]} : vector<27x128xf32> to vector<8x128xf32>
    %28 = vector.extract_strided_slice %23 {offsets = [0, 0], sizes = [8, 1], strides = [1, 1]} : vector<27x1xf32> to vector<8x1xf32>
    %29 = vector.extract_strided_slice %20 {offsets = [0, 0], sizes = [1, 128], strides = [1, 1]} : vector<3x128xf32> to vector<1x128xf32>
    %30 = vector.broadcast %28 : vector<8x1xf32> to vector<8x128xf32>
    %31 = vector.broadcast %29 : vector<1x128xf32> to vector<8x128xf32>
    %32 = arith.mulf %30, %31 : vector<8x128xf32>
    %33 = arith.addf %27, %32 : vector<8x128xf32>
    %c0_13 = arith.constant 0 : index
    %c0_14 = arith.constant 0 : index
    %34 = vector.load %arg8[%c0_13, %c0_14] : memref<3x128xf32, #tpu.memory_space<vmem>>, vector<1x128xf32>
    %35 = vector.broadcast %34 : vector<1x128xf32> to vector<8x128xf32>
    %36 = arith.mulf %35, %33 : vector<8x128xf32>
    %37 = arith.addf %26, %36 : vector<8x128xf32>
    %38 = vector.extract_strided_slice %22 {offsets = [8, 0], sizes = [8, 128], strides = [1, 1]} : vector<27x128xf32> to vector<8x128xf32>
    %39 = vector.extract_strided_slice %23 {offsets = [8, 0], sizes = [8, 1], strides = [1, 1]} : vector<27x1xf32> to vector<8x1xf32>
    %40 = vector.extract_strided_slice %20 {offsets = [1, 0], sizes = [1, 128], strides = [1, 1]} : vector<3x128xf32> to vector<1x128xf32>
    %41 = vector.broadcast %39 : vector<8x1xf32> to vector<8x128xf32>
    %42 = vector.broadcast %40 : vector<1x128xf32> to vector<8x128xf32>
    %43 = arith.mulf %41, %42 : vector<8x128xf32>
    %44 = arith.addf %38, %43 : vector<8x128xf32>
    %c1 = arith.constant 1 : index
    %c0_15 = arith.constant 0 : index
    %45 = vector.load %arg8[%c1, %c0_15] : memref<3x128xf32, #tpu.memory_space<vmem>>, vector<1x128xf32>
    %46 = vector.broadcast %45 : vector<1x128xf32> to vector<8x128xf32>
    %47 = arith.mulf %46, %44 : vector<8x128xf32>
    %48 = arith.addf %37, %47 : vector<8x128xf32>
    %49 = vector.extract_strided_slice %22 {offsets = [16, 0], sizes = [8, 128], strides = [1, 1]} : vector<27x128xf32> to vector<8x128xf32>
    %50 = vector.extract_strided_slice %23 {offsets = [16, 0], sizes = [8, 1], strides = [1, 1]} : vector<27x1xf32> to vector<8x1xf32>
    %51 = vector.extract_strided_slice %20 {offsets = [2, 0], sizes = [1, 128], strides = [1, 1]} : vector<3x128xf32> to vector<1x128xf32>
    %52 = vector.broadcast %50 : vector<8x1xf32> to vector<8x128xf32>
    %53 = vector.broadcast %51 : vector<1x128xf32> to vector<8x128xf32>
    %54 = arith.mulf %52, %53 : vector<8x128xf32>
    %55 = arith.addf %49, %54 : vector<8x128xf32>
    %c2 = arith.constant 2 : index
    %c0_16 = arith.constant 0 : index
    %56 = vector.load %arg8[%c2, %c0_16] : memref<3x128xf32, #tpu.memory_space<vmem>>, vector<1x128xf32>
    %57 = vector.broadcast %56 : vector<1x128xf32> to vector<8x128xf32>
    %58 = arith.mulf %57, %55 : vector<8x128xf32>
    %59 = arith.addf %48, %58 : vector<8x128xf32>
    %c0_17 = arith.constant 0 : index
    %c0_18 = arith.constant 0 : index
    %c0_19 = arith.constant 0 : index
    %60 = vector.load %arg6[%c0_17, %c0_18, %c0_19] : memref<1x8x128xf32, #tpu.memory_space<vmem>>, vector<1x8x128xf32>
    %61 = vector.shape_cast %60 : vector<1x8x128xf32> to vector<8x128xf32>
    %62 = vector.shape_cast %59 : vector<8x128xf32> to vector<1x8x128xf32>
    tpu.vector_store %arg6[%c0_17, %c0_18, %c0_19], %62 {strides = array<i32>} : memref<1x8x128xf32, #tpu.memory_space<vmem>>, vector<1x8x128xf32>,
    %63 = vector.extract_strided_slice %22 {offsets = [24, 0], sizes = [3, 128], strides = [1, 1]} : vector<27x128xf32> to vector<3x128xf32>
    %64 = vector.extract_strided_slice %23 {offsets = [24, 0], sizes = [3, 1], strides = [1, 1]} : vector<27x1xf32> to vector<3x1xf32>
    %65 = vector.broadcast %64 : vector<3x1xf32> to vector<3x128xf32>
    %66 = arith.mulf %65, %20 : vector<3x128xf32>
    %67 = arith.addf %63, %66 : vector<3x128xf32>
    %c0_20 = arith.constant 0 : index
    %c0_21 = arith.constant 0 : index
    %68 = vector.load %arg7[%c0_20, %c0_21] : memref<3x128xf32, #tpu.memory_space<vmem>>, vector<3x128xf32>
    tpu.vector_store %arg7[%c0_20, %c0_21], %67 {strides = array<i32>} : memref<3x128xf32, #tpu.memory_space<vmem>>, vector<3x128xf32>,
    return
  }
  func.func @transform_0(%arg0: i32) -> (i32, i32) {
    %c0_i32 = arith.constant 0 : i32
    %c0_i32_0 = arith.constant 0 : i32
    %c0_i32_1 = arith.constant 0 : i32
    return %c0_i32, %c0_i32_0 : i32, i32
  }
  func.func @transform_1(%arg0: i32) -> (i32, i32) {
    %c0_i32 = arith.constant 0 : i32
    %c0_i32_0 = arith.constant 0 : i32
    %c0_i32_1 = arith.constant 0 : i32
    return %c0_i32, %c0_i32_0 : i32, i32
  }
  func.func @transform_2(%arg0: i32) -> (i32, i32) {
    %c0_i32 = arith.constant 0 : i32
    %c0_i32_0 = arith.constant 0 : i32
    %c0_i32_1 = arith.constant 0 : i32
    return %c0_i32, %c0_i32_0 : i32, i32
  }
  func.func @transform_3(%arg0: i32) -> (i32, i32) {
    %c0_i32 = arith.constant 0 : i32
    %c0_i32_0 = arith.constant 0 : i32
    %c0_i32_1 = arith.constant 0 : i32
    return %c0_i32, %c0_i32_0 : i32, i32
  }
  func.func @transform_4(%arg0: i32) -> (i32, i32, i32) {
    %c0_i32 = arith.constant 0 : i32
    %c0_i32_0 = arith.constant 0 : i32
    %c0_i32_1 = arith.constant 0 : i32
    return %arg0, %c0_i32, %c0_i32_0 : i32, i32, i32
  }
  func.func @transform_5(%arg0: i32) -> (i32, i32, i32) {
    %c0_i32 = arith.constant 0 : i32
    %c0_i32_0 = arith.constant 0 : i32
    %c0_i32_1 = arith.constant 0 : i32
    return %arg0, %c0_i32, %c0_i32_0 : i32, i32, i32
  }
  func.func @transform_6(%arg0: i32) -> (i32, i32) {
    %c0_i32 = arith.constant 0 : i32
    %c0_i32_0 = arith.constant 0 : i32
    %c0_i32_1 = arith.constant 0 : i32
    return %c0_i32, %c0_i32_0 : i32, i32
  }
}

</mosaic_0001>

<bundles_post_ra>
// kernel: momentum_batch_forward_seq.1
= control target key start
LH: loop header
LB: loop body
LE: loop exit
PB: predicated region body
PF: predicated region fallthrough
CT: control target
= control target key end

     0   :  { %s654_s21 = smov 0   ;;  %s724_s0 = inlined_call_operand.vmem [shape: f32[3,128], index: 0, kind: input, shape index: {}, may-alias: {0,6}]   ;;  %s725_s1 = inlined_call_operand.vmem [shape: f32[7,128], index: 1, kind: input, shape index: {}]   ;;  %s726_s2 = inlined_call_operand.vmem [shape: f32[27,8], index: 2, kind: input, shape index: {}]   ;;  %s727_s3 = inlined_call_operand.vmem [shape: f32[27,1], index: 3, kind: input, shape index: {}]   ;;  %s728_s4 = inlined_call_operand.vmem [shape: f32[4,8,128], index: 4, kind: input, shape index: {}]   ;;  %s729_s5 = inlined_call_operand.vmem [shape: f32[4,8,128], index: 5, kind: output, shape index: {0}]   ;;  %s730_s6 = inlined_call_operand.vmem [shape: f32[3,128], index: 6, kind: output, shape index: {1}, may-alias: {0,6}]  }
   0x1 LB: > { %s560_s22 = sadd.s32 4294967295, %s616_s21   ;;  %p564_p0 = scmp.ge.s32.totalorder %s616_s21, 1  ;;  %s616_s21 = sphi %s654_s21, %s17_s21  }
   0x2   : > { %p209_p1 = scmp.lt.s32.totalorder %s616_s21, 5 }
   0x4   : > { %p210_p2 = pnand %p564_p0, %p209_p1 }
   0x5   : > { %p237_p3 = scmp.lt.s32.totalorder (!%p210_p2), %s560_s22, 3  ;;  %p567_p4 = scmp.ne.s32.totalorder (!%p210_p2), %s560_s22, 0 }
   0x6   : > { %213 = sbr.rel (%p210_p2) target bundleno = 328 (0x148), region = 40 }
   0xb   : > { %s238_s23 = scalar_select %p237_p3, %s560_s22, 3 }
   0xc   : > { %248 = sbr.rel (%p567_p4) target bundleno = 97 (0x61), region = 44 }
   0xd   : > { %s565_s24 = sshll.u32 %s238_s23, 3 }
   0xe   : > { %s665_s27 = scalar_lea.vmem %s728_s4, %s565_s24  ;;  %s670_s30 = scalar_lea.vmem %s729_s5, %s565_s24 }
  0x11   : > { %v249_v0 = vld [vmem:[%s724_s0] sm:$0x7]  ;;  %vm252_vm0 = vcmask 1046528   ;;  %vm272_vm1 = vcmask 1042432  }
  0x12   : > { %v251_v1 = vld [vmem:[%s725_s1] sm:$0x7f]  ;;  %250 = vst [vmem:[%s730_s6] sm:$0x7] %v249_v0 }
  0x13   : > { %v253_v2 = vsel %vm252_vm0, %v251_v1, -inf }
  0x14   : > { %v254_v3 = vrot.slane %v253_v2, 4 }
  0x16   : > { %v255_v4 = vmax.f32 %v253_v2, %v254_v3 }
  0x18   : > { %v256_v5 = vrot.slane %v255_v4, 2 }
  0x1a   : > { %v257_v6 = vmax.f32 %v255_v4, %v256_v5 }
  0x1c   : > { %v258_v7 = vrot.slane %v257_v6, 1 }
  0x1e   : > { %v259_v8 = vmax.f32 %v257_v6, %v258_v7 }
  0x20   : > { %v260_v9 = vsub.f32 %v251_v1, %v259_v8 }
  0x22   : > { %v261_v10 = vmul.f32 1.442695, %v260_v9 }
  0x24   : > { %604 = vpow2.f32 %v261_v10 }
  0x31   : > { %v605_v11 = vpop.eup %604 }
  0x32   : > { %v263_v12 = vsel %vm252_vm0, %v605_v11, 0.0 }
  0x33   : > { %v264_v13 = vrot.slane %v263_v12, 4 }
  0x35   : > { %v265_v14 = vadd.f32 %v264_v13, %v263_v12 }
  0x37   : > { %v266_v15 = vrot.slane %v265_v14, 2 }
  0x39   : > { %v267_v16 = vadd.f32 %v266_v15, %v265_v14 }
  0x3b   : > { %v268_v17 = vrot.slane %v267_v16, 1 }
  0x3d   : > { %v269_v18 = vadd.f32 %v268_v17, %v267_v16 }
  0x3f   : > { %606 = vrcp.f32 %v269_v18 }
  0x4c   : > { %v607_v19 = vpop.eup %606 }
  0x4d   : > { %v271_v20 = vmul.f32 %v607_v19, %v605_v11 }
  0x4f   : > { %v273_v21 = vsel %vm272_vm1, %v271_v20, 0.0  ;;  %v284_v22 = vrot.slane %v271_v20, 6  ;;  %v289_v23 = vrot.slane %v271_v20, 4  ;;  %v294_v24 = vrot.slane %v271_v20, 2 }
  0x50   : > { %v274_v25 = vrot.slane %v273_v21, 4 }
  0x51   : > { %v286_v26 = vsub.f32 %v271_v20, %v284_v22  ;;  %v291_v27 = vsub.f32 %v271_v20, %v289_v23  ;;  %v296_v28 = vsub.f32 %v271_v20, %v294_v24 }
  0x52   : > { %v275_v29 = vadd.f32 %v274_v25, %v273_v21 }
  0x53   : > { %v287_v30 = vmul.f32 2.0, %v286_v26  ;;  %v292_v31 = vmul.f32 2.0, %v291_v27  ;;  %v297_v32 = vmul.f32 2.0, %v296_v28 }
  0x54   : > { %v276_v33 = vrot.slane %v275_v29, 2 }
  0x55   : > { %288 = vst [vmem:[#allocation2 - $0x4] sm:$0x10] %v287_v30  ;;  %293 = vst [vmem:[#allocation2 - $0x4] sm:$0x20] %v292_v31 }
  0x56   : > { %298 = vst [vmem:[#allocation2 - $0x4] sm:$0x40] %v297_v32  ;;  %v277_v34 = vadd.f32 %v276_v33, %v275_v29 }
  0x58   : > { %v278_v35 = vrot.slane %v277_v34, 1 }
  0x5a   : > { %v279_v36 = vadd.f32 %v278_v35, %v277_v34 }
  0x5c   : > { %v280_v37 = vmul.f32 2.0, %v279_v36 }
  0x5e   : > { %v281_v38 = vadd.f32 %v280_v37, %v271_v20 }
  0x60   : > { %282 = vst [vmem:[#allocation3 - $0x3] sm:$0x8] %v281_v38 }
  0x61 PF: > { %v300_v39 = vld [vmem:[%s730_s6] sm:$0x7]  ;;  %vm302_vm2 = vcmask 1042432   ;;  %vm328_vm3 = vcmask 64512   ;;  %v325_v43 = vld [vmem:[%s726_s2 + $0x8] sm:$0xff]  ;;  %v326_v44 = vld [vmem:[%s726_s2 + $0x10] sm:$0xff]  ;;  %v316_v59 = vlaneseq }
  0x62   : > { %v685_v40 = vld [vmem:[%s665_s27] sm:$0xff]  ;;  %v301_v42 = vand.u32 2147483647, %v300_v39  ;;  %v327_v45 = vld [vmem:[%s726_s2 + $0x18] sm:$0x7]  ;;  %v427_v47 = vld [vmem:[%s727_s3 + $0x8] sm:$0xff]  ;;  %588 = vmatprep.mubr.msk.f32.mxu1 %vm328_vm3, %v326_v44 }
  0x63   : > { %v324_v41 = vld [vmem:[%s726_s2] sm:$0xff]  ;;  %583 = vmatprep.subr.mxu0 %v685_v40  ;;  %591 = vmatprep.subr.mxu1 %v685_v40  ;;  %v618_v48 = vmov 0   ;;  %v428_v49 = vld [vmem:[%s727_s3 + $0x10] sm:$0xff]  ;;  %v429_v50 = vld [vmem:[%s727_s3 + $0x18] sm:$0x7]  ;;  %v317_v60 = vshrl.u32 %v316_v59, 7 }
  0x64   : > { %585 = vmatprep.mubr.msk.f32.mxu0 %vm328_vm3, %v324_v41  ;;  %584 = vmatpush3.msra.mxu0 %v685_v40  ;;  %v303_v46 = vsel %vm302_vm2, %v301_v42, -inf  ;;  %v426_v51 = vld [vmem:[%s727_s3] sm:$0xff] }
  0x65   : > { %586 = vmatmul.mubr.msk.f32.vlgmr.msra.gmra.mxu0 %vm328_vm3, %v325_v43  ;;  %592 = vmatpush3.msra.mxu1 %v685_v40  ;;  %v318_v61 = vsub.s32 0, %v317_v60  ;;  %v463_v4 = vsub.s32 1, %v317_v60  ;;  %v481_v5 = vsub.s32 2, %v317_v60  ;;  %v573_v21 = vld [vmem:[#allocation2] ss:$0 sm:$0xff] }
  0x66   : > { %304 = vmax.xlane.f32.xlu0 %v303_v46  ;;  %589 = vmatmul.mubr.msk.f32.vlgmr.msra.gmra.mxu1 %vm328_vm3, %v327_v45  ;;  %v574_v26 = vld [vmem:[#allocation2 + $0x1] ss:$0 sm:$0xff]  ;;  %v575_v29 = vld [vmem:[#allocation2 + $0x2] ss:$0 sm:$0xff] }
  0x67   : > { %609 = vset.pattern.permute.xlu1 %v618_v48  ;;  %608 = vset.pattern.permute.xlu0 %v618_v48  ;;  %v319_v63 = vrot.slane %v685_v40, %v318_v61  ;;  %v572_v15 = vld [vmem:[#allocation3] ss:$0 sm:$0xff] }
  0x68   : > { %458 = vperm.xlu1 %609, %v427_v47   ;;  %v437_v24 = vmul.f32 %v572_v15, %v685_v40 }
  0x69   : > { %v320_v1 = vsub.f32 %v319_v63, %v300_v39 }
  0x6c   : > { %476 = vperm.xlu1 %609, %v428_v49  }
  0x70   : > { %495 = vperm.xlu1 %609, %v429_v50  }
  0x7c   : > { %440 = vperm.xlu0 %608, %v426_v51  }
  0xe3   : > { %v459_v62 = vpop.permute.xlu1 %458 }
  0xe7   : > { %v477_v0 = vpop.permute.xlu1 %476 }
  0xeb   : > { %v496_v6 = vpop.permute.xlu1 %495 }
  0xef   : > { %v305_v52 = vpop.xlane.xlu0 %304 }
  0xf0   : > { %v306_v53 = vrot.slane %v305_v52, 4 }
  0xf2   : > { %v307_v54 = vmax.f32 %v305_v52, %v306_v53 }
  0xf4   : > { %v308_v55 = vrot.slane %v307_v54, 2 }
  0xf6   : > { %v309_v56 = vmax.f32 %v307_v54, %v308_v55 }
  0xf7   : > { %v441_v8 = vpop.permute.xlu0 %440 }
  0xf8   : > { %v310_v57 = vrot.slane %v309_v56, 1 }
  0xfa   : > { %v311_v58 = vmax.f32 %v309_v56, %v310_v57 }
  0xfc   : > { %593 = vpush %v311_v58 }
 0x125   : > { %v587_v9 = vpop.f32.mrf.mxu0 }
 0x126   : > { %v590_v10 = vpop.f32.mrf.mxu1 }
 0x127   : > { %v407_v20 = vpop.f32.mrf.mxu0 }
 0x128   : > { %v417_v22 = vpop.f32.mrf.mxu1 }
 0x12d   : > { %s594_s9 = spop %593 }
 0x12e   : > { %p313_p5 = scmp.eq.f32.partialorder %s594_s9, 0.0 }
 0x130   : > { %s314_s10 = scalar_select %p313_p5, 1, 0 }
 0x132   : > { %s315_s11 = scvt.s32.f32 %s314_s10 }
 0x134   : > { %v321_v2 = vstv %s315_s11 }
 0x135   : > { %v322_v3 = vmul.f32 %v321_v2, %v320_v1 }
 0x137   : > { %v323_v7 = vadd.f32 %v322_v3, %v300_v39 }
 0x139   : > { %v464_v11 = vrot.slane %v323_v7, %v463_v4  ;;  %v482_v12 = vrot.slane %v323_v7, %v481_v5  ;;  %v498_v13 = vmul.f32 %v496_v6, %v323_v7  ;;  %v446_v14 = vrot.slane %v323_v7, %v318_v61 }
 0x13b   : > { %v465_v16 = vmul.f32 %v464_v11, %v459_v62  ;;  %v483_v17 = vmul.f32 %v482_v12, %v477_v0  ;;  %v447_v18 = vmul.f32 %v446_v14, %v441_v8  ;;  %v499_v19 = vadd.f32 %v590_v10, %v498_v13 }
 0x13d   : > { %v466_v23 = vadd.f32 %v587_v9, %v465_v16  ;;  %v448_v25 = vadd.f32 %v447_v18, %v407_v20  ;;  %500 = vst [vmem:[%s730_s6] sm:$0x7] %v499_v19  ;;  %v484_v28 = vadd.f32 %v483_v17, %v417_v22 }
 0x13f   : > { %v454_v27 = vmul.f32 %v573_v21, %v448_v25  ;;  %v472_v30 = vmul.f32 %v574_v26, %v466_v23  ;;  %v490_v33 = vmul.f32 %v575_v29, %v484_v28 }
 0x141   : > { %v455_v31 = vadd.f32 %v454_v27, %v437_v24 }
 0x143   : > { %v473_v32 = vadd.f32 %v472_v30, %v455_v31 }
 0x145   : > { %v491_v34 = vadd.f32 %v490_v33, %v473_v32 }
 0x147   : > { %492 = vst [vmem:[%s670_s30] sm:$0xff] %v491_v34 }
 0x148 PF: > { %s17_s21 = sadd.s32 1, %s616_s21  }
 0x149   : > { %p14_p6 = scmp.ge.s32.totalorder %s17_s21, 6  }
 0x14b   :  { %16 = sbr.rel (!%p14_p6) target bundleno = 1 (0x1), region = 82 }

</bundles_post_ra>
